<compile_context>
chip_gen: v6e
topology: v6e:2x2x1
jax: 0.10.0
libtpu: 0.0.40
codegen_flags: <defaults>
</compile_context>

<pallas_src>
import math
import functools

import numpy as np
import jax
import jax.numpy as jnp
from jax.experimental import pallas as pl
from jax.experimental.pallas import tpu as pltpu


def build_positional_encoding(max_seq_length: int, d_model: int) -> jnp.ndarray:
    """Exact replica of the torch double-loop buffer init (d_model must be even)."""
    pe = np.zeros((max_seq_length, d_model), dtype=np.float32)
    for pos in range(max_seq_length):
        for dim in range(0, d_model, 2):
            pe[pos, dim] = math.sin(pos / 10000 ** (2 * dim / d_model))
            pe[pos, dim + 1] = math.cos(pos / 10000 ** ((2 * dim + 1) / d_model))
    return jnp.asarray(pe)


def _pe_kernel(x_ref, pe_ref, o_ref, *, scale):
    # Plain fused mul-add on same-shape tiles (no broadcast in kernel).
    o_ref[...] = (x_ref[...] * scale + pe_ref[...]).astype(o_ref.dtype)


def _pe_dropout_kernel(x_ref, pe_ref, u_ref, o_ref, *, scale, rate):
    y = x_ref[...] * scale + pe_ref[...]
    keep = u_ref[...] >= rate                      # Bernoulli(1 - rate)
    inv_keep = 1.0 / (1.0 - rate)
    o_ref[...] = jnp.where(keep, y * inv_keep, 0.0).astype(o_ref.dtype)


def _pick_batch_tile(B, S, D, itemsize, budget_bytes=2 << 20):
    """Largest divisor of B whose (Bt, S, D) tile fits the per-tile budget."""
    best = 1
    for bt in range(1, B + 1):
        if B % bt == 0 and bt * S * D * itemsize <= budget_bytes:
            best = bt
    return best


def positional_encoder_forward(x, positional_encoding, d_model, max_seq_length,
                               dropout_rate, rng_key=None):
    # Trim to max_seq_length (same as the PyTorch forward).
    if x.shape[1] > max_seq_length:
        x = x[:, :max_seq_length]

    B, S, D = x.shape
    scale = math.sqrt(d_model)

    # splice_by_size: slice the PE buffer along its SECOND dim by the seq length,
    # then broadcast against (B, S, D) exactly like the reference does.
    pe_sliced = positional_encoding[:, :S]                     # (max_seq_length, S)
    pe_2d = jnp.broadcast_to(pe_sliced, (S, D)).astype(x.dtype)  # requires S==D==L

    # Fuse several batch rows per grid step; tiles stay lane-dense (full D last).
    bt = _pick_batch_tile(B, S, D, jnp.dtype(x.dtype).itemsize)
    grid = (B // bt,)

    # Pre-broadcast PE to the tile shape so the kernel add needs no broadcast;
    # constant index_map keeps it resident across the grid.
    pe_tile = jnp.broadcast_to(pe_2d[None], (bt, S, D))

    x_spec = pl.BlockSpec((bt, S, D), lambda i: (i, 0, 0))
    pe_spec = pl.BlockSpec((bt, S, D), lambda i: (0, 0, 0))
    out_spec = pl.BlockSpec((bt, S, D), lambda i: (i, 0, 0))

    compiler_params = pltpu.CompilerParams(
        dimension_semantics=("parallel",),
        vmem_limit_bytes=64 * 1024 * 1024,
    )

    rate = float(dropout_rate)
    if rate > 0.0:
        if rng_key is None:
            rng_key = jax.random.PRNGKey(0)
        # Uniform randoms generated wrapper-side (portable: no TPU-only PRNG
        # primitives inside the kernel).
        u = jax.random.uniform(rng_key, (B, S, D), dtype=jnp.float32)
        kernel = functools.partial(_pe_dropout_kernel, scale=scale, rate=rate)
        return pl.pallas_call(
            kernel,
            out_shape=jax.ShapeDtypeStruct((B, S, D), x.dtype),
            grid=grid,
            in_specs=[x_spec, pe_spec, x_spec],
            out_specs=out_spec,
            compiler_params=compiler_params,
        )(x, pe_tile, u)

    kernel = functools.partial(_pe_kernel, scale=scale)
    return pl.pallas_call(
        kernel,
        out_shape=jax.ShapeDtypeStruct((B, S, D), x.dtype),
        grid=grid,
        in_specs=[x_spec, pe_spec],
        out_specs=out_spec,
        compiler_params=compiler_params,
    )(x, pe_tile)


if __name__ == "__main__":
    # Shapes consistent with the module's (as-written) broadcasting:
    # S == d_model == max_seq_length.  D=128 keeps the tiles lane-dense.
    d_model = 128
    max_seq_length = 128
    dropout_rate = 0.1
    B, S = 4, 128

    key = jax.random.PRNGKey(0)
    k_x, k_drop = jax.random.split(key)
    x = jax.random.normal(k_x, (B, S, d_model), dtype=jnp.float32)

    pe = build_positional_encoding(max_seq_length, d_model)

    # Deterministic no-dropout path: compare against a pure-JAX reference.
    out_nodrop = positional_encoder_forward(x, pe, d_model, max_seq_length,
                                            0.0)
    jax.block_until_ready(out_nodrop)
    ref = x * math.sqrt(d_model) + pe[:, :S]
    assert out_nodrop.shape == (B, S, d_model)
    assert jnp.allclose(out_nodrop, ref, atol=1e-5, rtol=1e-5)

    # Training-mode dropout path: every element must be either dropped (0) or
    # the reference value rescaled by 1/(1-rate).
    out_drop = positional_encoder_forward(x, pe, d_model, max_seq_length,
                                          dropout_rate, rng_key=k_drop)
    jax.block_until_ready(out_drop)
    inv_keep = 1.0 / (1.0 - dropout_rate)
    ok = jnp.all(
        jnp.isclose(out_drop, 0.0)
        | jnp.isclose(out_drop, ref * inv_keep, atol=1e-4, rtol=1e-4)
    )
    assert bool(ok)

    print("KERNEL_OK")
</pallas_src>

<mosaic_0001>
module attributes {stable_mosaic.version = 11 : i64} {
  func.func @_pe_kernel(%arg0: i32, %arg1: memref<4x128x128xf32, #tpu.memory_space<vmem>>, %arg2: memref<4x128x128xf32, #tpu.memory_space<vmem>>, %arg3: memref<4x128x128xf32, #tpu.memory_space<vmem>>) attributes {dimension_semantics = [#tpu.dimension_semantics<parallel>], iteration_bounds = array<i64: 1>, scalar_prefetch = 0 : i64, scratch_operands = 0 : i64, tpu.core_type = #tpu.core_type<tc>, window_params = [{transform_indices = @transform_0, window_bounds = array<i64: 4, 128, 128>}, {pipeline_mode = #tpu.pipeline_mode<synchronous>, transform_indices = @transform_1, window_bounds = array<i64: 4, 128, 128>}, {transform_indices = @transform_2, window_bounds = array<i64: 4, 128, 128>}]} {
    %c0 = arith.constant 0 : index
    %c0_0 = arith.constant 0 : index
    %c0_1 = arith.constant 0 : index
    %0 = vector.load %arg1[%c0, %c0_0, %c0_1] : memref<4x128x128xf32, #tpu.memory_space<vmem>>, vector<4x128x128xf32>
    %cst = arith.constant 11.3137083 : f32
    %1 = vector.broadcast %cst : f32 to vector<4x128x128xf32>
    %2 = arith.mulf %0, %1 : vector<4x128x128xf32>
    %c0_2 = arith.constant 0 : index
    %c0_3 = arith.constant 0 : index
    %c0_4 = arith.constant 0 : index
    %3 = vector.load %arg2[%c0_2, %c0_3, %c0_4] : memref<4x128x128xf32, #tpu.memory_space<vmem>>, vector<4x128x128xf32>
    %4 = arith.addf %2, %3 : vector<4x128x128xf32>
    %c0_5 = arith.constant 0 : index
    %c0_6 = arith.constant 0 : index
    %c0_7 = arith.constant 0 : index
    %5 = vector.load %arg3[%c0_5, %c0_6, %c0_7] : memref<4x128x128xf32, #tpu.memory_space<vmem>>, vector<4x128x128xf32>
    tpu.vector_store %arg3[%c0_5, %c0_6, %c0_7], %4 {strides = array<i32>} : memref<4x128x128xf32, #tpu.memory_space<vmem>>, vector<4x128x128xf32>,
    return
  }
  func.func @transform_0(%arg0: i32) -> (i32, i32, i32) {
    %c0_i32 = arith.constant 0 : i32
    %c0_i32_0 = arith.constant 0 : i32
    %c0_i32_1 = arith.constant 0 : i32
    return %arg0, %c0_i32, %c0_i32_0 : i32, i32, i32
  }
  func.func @transform_1(%arg0: i32) -> (i32, i32, i32) {
    %c0_i32 = arith.constant 0 : i32
    %c0_i32_0 = arith.constant 0 : i32
    %c0_i32_1 = arith.constant 0 : i32
    %c0_i32_2 = arith.constant 0 : i32
    return %c0_i32, %c0_i32_0, %c0_i32_1 : i32, i32, i32
  }
  func.func @transform_2(%arg0: i32) -> (i32, i32, i32) {
    %c0_i32 = arith.constant 0 : i32
    %c0_i32_0 = arith.constant 0 : i32
    %c0_i32_1 = arith.constant 0 : i32
    return %arg0, %c0_i32, %c0_i32_0 : i32, i32, i32
  }
}

</mosaic_0001>

<bundles_post_ra>
// kernel: tpu_custom_call.1
= control target key start
LH: loop header
LB: loop body
LE: loop exit
PB: predicated region body
PF: predicated region fallthrough
CT: control target
= control target key end

     0   :  { %7 = vsyncpa [#allocation3], 0  ;;  %s487_s0 = inlined_call_operand.hbm [shape: f32[4,128,128], index: 0, kind: input, shape index: {}]   ;;  %s488_s1 = inlined_call_operand.hbm [shape: f32[4,128,128], index: 1, kind: input, shape index: {}]   ;;  %s489_s2 = inlined_call_operand.hbm [shape: f32[4,128,128], index: 2, kind: output, shape index: {}]  }
   0x1   :  { %8 = vsyncpa [#allocation6], 0 }
   0x2   :  { %9 = vsyncpa [#allocation4], 0  ;;  %s449_s9 = smov [#allocation2]  }
   0x3   :  { %s15_s10 = sshll.u32 %s449_s9, 4  ;;  %s16_s10 = int_to_ptr.vmem [resolvable:$true] %s15_s10 }
   0x4   :  { %s391_s11 = scalar_lea.vmem %s16_s10, 8192  ;;  %p396_p1 = scmp.lt.s32.totalorder %s16_s10, %s16_s10 }
   0x5   :  { %p392_p0 = scmp.ne.s32.totalorder %s16_s10, %s391_s11  ;;  %p397_p2 = scmp.lt.s32.totalorder %s391_s11, %s391_s11 }
   0x7   :  { %p398_p3 = por %p397_p2, %p396_p1 }
   0x9   :  { %p399_p4 = pnand %p398_p3, %p392_p0 }
   0xb   :  { %402 = shalt.err (!%p399_p4)
}
   0xc   :  { %s450_s12 = smov 128   ;;  %s451_s13 = smov 8  }
   0xd   :  { %21 = dma.hbm_to_vmem [thread:$0]  %s487_s0, 8192, %s16_s10, [#allocation3], %s450_s12, %s450_s12, %s451_s13  }
   0xe   :  { %s452_s16 = smov [#allocation5]  }
   0xf   :  { %s27_s17 = sshll.u32 %s452_s16, 4  ;;  %s28_s17 = int_to_ptr.vmem [resolvable:$true] %s27_s17 }
  0x10   :  { %s411_s18 = scalar_lea.vmem %s28_s17, 8192  ;;  %p416_p6 = scmp.lt.s32.totalorder %s28_s17, %s28_s17 }
  0x11   :  { %p412_p5 = scmp.ne.s32.totalorder %s28_s17, %s411_s18  ;;  %p417_p7 = scmp.lt.s32.totalorder %s411_s18, %s411_s18 }
  0x13   :  { %p418_p8 = por %p417_p7, %p416_p6 }
  0x15   :  { %p419_p9 = pnand %p418_p8, %p412_p5 }
  0x17   :  { %422 = shalt.err (!%p419_p9)
}
  0x18   :  { %33 = dma.hbm_to_vmem [thread:$0]  %s488_s1, 8192, %s28_s17, [#allocation6], %s450_s12, %s450_s12, %s451_s13  }
  0x19   :  { %443 = dma.done.wait [#allocation3], 8192  }
  0x1a   :  { %444 = vsyncadd [#allocation3], 4294959104 }
  0x1b   :  { %445 = dma.done.wait [#allocation6], 8192  }
  0x1c   :  { %446 = vsyncadd [#allocation6], 4294959104  ;;  %v40_v0 = vld [vmem:[#allocation2] sm:$0xff]  ;;  %v41_v2 = vld [vmem:[#allocation2 + $0x8] sm:$0xff]  ;;  %s453_s0 = smov [#allocation7]  }
  0x1d   :  { %v168_v1 = vld [vmem:[#allocation5] sm:$0xff]  ;;  %v104_v3 = vmul.f32 11.313708, %v40_v0  ;;  %v105_v4 = vmul.f32 11.313708, %v41_v2  ;;  %v169_v5 = vld [vmem:[#allocation5 + $0x8] sm:$0xff] }
  0x1e   :  { %v42_v6 = vld [vmem:[#allocation2 + $0x10] sm:$0xff]  ;;  %v43_v9 = vld [vmem:[#allocation2 + $0x18] sm:$0xff]  ;;  %v44_v14 = vld [vmem:[#allocation2 + $0x20] sm:$0xff]  ;;  %s365_s1 = sshll.u32 %s453_s0, 4  ;;  %s366_s1 = int_to_ptr.vmem [resolvable:$true] %s365_s1 }
  0x1f   :  { %v106_v7 = vmul.f32 11.313708, %v42_v6  ;;  %v170_v8 = vld [vmem:[#allocation5 + $0x10] sm:$0xff]  ;;  %v171_v10 = vld [vmem:[#allocation5 + $0x18] sm:$0xff]  ;;  %v232_v11 = vadd.f32 %v168_v1, %v104_v3  ;;  %v233_v12 = vadd.f32 %v169_v5, %v105_v4  ;;  %v107_v13 = vmul.f32 11.313708, %v43_v9  ;;  %p428_p11 = scmp.lt.s32.totalorder %s366_s1, %s366_s1 }
  0x20   :  { %v172_v15 = vld [vmem:[#allocation5 + $0x20] sm:$0xff]  ;;  %v45_v16 = vld [vmem:[#allocation2 + $0x28] sm:$0xff]  ;;  %v108_v18 = vmul.f32 11.313708, %v44_v14  ;;  %v46_v21 = vld [vmem:[#allocation2 + $0x30] sm:$0xff]  ;;  %s423_s21 = scalar_lea.vmem %s366_s1, 8192 }
  0x21   :  { %v234_v17 = vadd.f32 %v170_v8, %v106_v7  ;;  %v109_v19 = vmul.f32 11.313708, %v45_v16  ;;  %v173_v20 = vld [vmem:[#allocation5 + $0x28] sm:$0xff]  ;;  %296 = vst [vmem:[#allocation7] sm:$0xff] %v232_v11  ;;  %297 = vst [vmem:[#allocation7 + $0x8] sm:$0xff] %v233_v12  ;;  %v235_v22 = vadd.f32 %v171_v10, %v107_v13  ;;  %v174_v24 = vld [vmem:[#allocation5 + $0x30] sm:$0xff]  ;;  %p424_p10 = scmp.ne.s32.totalorder %s366_s1, %s423_s21  ;;  %p429_p12 = scmp.lt.s32.totalorder %s423_s21, %s423_s21 }
  0x22   :  { %v110_v23 = vmul.f32 11.313708, %v46_v21  ;;  %v47_v25 = vld [vmem:[#allocation2 + $0x38] sm:$0xff]  ;;  %v236_v27 = vadd.f32 %v172_v15, %v108_v18  ;;  %v48_v30 = vld [vmem:[#allocation2 + $0x40] sm:$0xff]  ;;  %v49_v32 = vld [vmem:[#allocation2 + $0x48] sm:$0xff] }
  0x23   :  { %v175_v26 = vld [vmem:[#allocation5 + $0x38] sm:$0xff]  ;;  %298 = vst [vmem:[#allocation7 + $0x10] sm:$0xff] %v234_v17  ;;  %v237_v28 = vadd.f32 %v173_v20, %v109_v19  ;;  %v111_v29 = vmul.f32 11.313708, %v47_v25  ;;  %v176_v31 = vld [vmem:[#allocation5 + $0x40] sm:$0xff]  ;;  %299 = vst [vmem:[#allocation7 + $0x18] sm:$0xff] %v235_v22  ;;  %p430_p13 = por %p429_p12, %p428_p11 }
  0x24   :  { %v238_v33 = vadd.f32 %v174_v24, %v110_v23  ;;  %v112_v34 = vmul.f32 11.313708, %v48_v30  ;;  %v113_v35 = vmul.f32 11.313708, %v49_v32  ;;  %v177_v36 = vld [vmem:[#allocation5 + $0x48] sm:$0xff]  ;;  %v50_v37 = vld [vmem:[#allocation2 + $0x50] sm:$0xff] }
  0x25   :  { %300 = vst [vmem:[#allocation7 + $0x20] sm:$0xff] %v236_v27  ;;  %301 = vst [vmem:[#allocation7 + $0x28] sm:$0xff] %v237_v28  ;;  %v239_v38 = vadd.f32 %v175_v26, %v111_v29  ;;  %v114_v39 = vmul.f32 11.313708, %v50_v37  ;;  %v178_v40 = vld [vmem:[#allocation5 + $0x50] sm:$0xff]  ;;  %v51_v41 = vld [vmem:[#allocation2 + $0x58] sm:$0xff]  ;;  %p431_p0 = pnand %p430_p13, %p424_p10 }
  0x26   :  { %v179_v42 = vld [vmem:[#allocation5 + $0x58] sm:$0xff]  ;;  %302 = vst [vmem:[#allocation7 + $0x30] sm:$0xff] %v238_v33  ;;  %v240_v43 = vadd.f32 %v176_v31, %v112_v34  ;;  %v241_v44 = vadd.f32 %v177_v36, %v113_v35  ;;  %v115_v45 = vmul.f32 11.313708, %v51_v41  ;;  %v52_v46 = vld [vmem:[#allocation2 + $0x60] sm:$0xff]  ;;  %v53_v48 = vld [vmem:[#allocation2 + $0x68] sm:$0xff] }
  0x27   :  { %v180_v47 = vld [vmem:[#allocation5 + $0x60] sm:$0xff]  ;;  %303 = vst [vmem:[#allocation7 + $0x38] sm:$0xff] %v239_v38  ;;  %v242_v49 = vadd.f32 %v178_v40, %v114_v39  ;;  %v116_v50 = vmul.f32 11.313708, %v52_v46  ;;  %v117_v51 = vmul.f32 11.313708, %v53_v48 }
  0x28   :  { %v181_v52 = vld [vmem:[#allocation5 + $0x68] sm:$0xff]  ;;  %v54_v53 = vld [vmem:[#allocation2 + $0x70] sm:$0xff]  ;;  %304 = vst [vmem:[#allocation7 + $0x40] sm:$0xff] %v240_v43  ;;  %305 = vst [vmem:[#allocation7 + $0x48] sm:$0xff] %v241_v44  ;;  %v243_v54 = vadd.f32 %v179_v42, %v115_v45 }
  0x29   :  { %v118_v55 = vmul.f32 11.313708, %v54_v53  ;;  %v182_v56 = vld [vmem:[#allocation5 + $0x70] sm:$0xff]  ;;  %v55_v57 = vld [vmem:[#allocation2 + $0x78] sm:$0xff]  ;;  %306 = vst [vmem:[#allocation7 + $0x50] sm:$0xff] %v242_v49  ;;  %v244_v59 = vadd.f32 %v180_v47, %v116_v50  ;;  %v245_v60 = vadd.f32 %v181_v52, %v117_v51  ;;  %v56_v62 = vld [vmem:[#allocation2 + $0x80] sm:$0xff] }
  0x2a   :  { %v183_v58 = vld [vmem:[#allocation5 + $0x78] sm:$0xff]  ;;  %v119_v61 = vmul.f32 11.313708, %v55_v57  ;;  %v184_v63 = vld [vmem:[#allocation5 + $0x80] sm:$0xff]  ;;  %v57_v0 = vld [vmem:[#allocation2 + $0x88] sm:$0xff]  ;;  %307 = vst [vmem:[#allocation7 + $0x58] sm:$0xff] %v243_v54 }
  0x2b   :  { %v246_v1 = vadd.f32 %v182_v56, %v118_v55  ;;  %v120_v2 = vmul.f32 11.313708, %v56_v62  ;;  %v121_v3 = vmul.f32 11.313708, %v57_v0  ;;  %v185_v4 = vld [vmem:[#allocation5 + $0x88] sm:$0xff]  ;;  %v58_v5 = vld [vmem:[#allocation2 + $0x90] sm:$0xff] }
  0x2c   :  { %308 = vst [vmem:[#allocation7 + $0x60] sm:$0xff] %v244_v59  ;;  %309 = vst [vmem:[#allocation7 + $0x68] sm:$0xff] %v245_v60  ;;  %v247_v6 = vadd.f32 %v183_v58, %v119_v61  ;;  %v122_v7 = vmul.f32 11.313708, %v58_v5  ;;  %v186_v8 = vld [vmem:[#allocation5 + $0x90] sm:$0xff]  ;;  %v59_v9 = vld [vmem:[#allocation2 + $0x98] sm:$0xff] }
  0x2d   :  { %v187_v10 = vld [vmem:[#allocation5 + $0x98] sm:$0xff]  ;;  %310 = vst [vmem:[#allocation7 + $0x70] sm:$0xff] %v246_v1  ;;  %v248_v11 = vadd.f32 %v184_v63, %v120_v2  ;;  %v249_v12 = vadd.f32 %v185_v4, %v121_v3  ;;  %v123_v13 = vmul.f32 11.313708, %v59_v9  ;;  %v60_v14 = vld [vmem:[#allocation2 + $0xa0] sm:$0xff]  ;;  %v61_v16 = vld [vmem:[#allocation2 + $0xa8] sm:$0xff] }
  0x2e   :  { %v188_v15 = vld [vmem:[#allocation5 + $0xa0] sm:$0xff]  ;;  %311 = vst [vmem:[#allocation7 + $0x78] sm:$0xff] %v247_v6  ;;  %v250_v17 = vadd.f32 %v186_v8, %v122_v7  ;;  %v124_v18 = vmul.f32 11.313708, %v60_v14  ;;  %v125_v19 = vmul.f32 11.313708, %v61_v16 }
  0x2f   :  { %v189_v20 = vld [vmem:[#allocation5 + $0xa8] sm:$0xff]  ;;  %v62_v21 = vld [vmem:[#allocation2 + $0xb0] sm:$0xff]  ;;  %312 = vst [vmem:[#allocation7 + $0x80] sm:$0xff] %v248_v11  ;;  %313 = vst [vmem:[#allocation7 + $0x88] sm:$0xff] %v249_v12  ;;  %v251_v22 = vadd.f32 %v187_v10, %v123_v13 }
  0x30   :  { %v126_v23 = vmul.f32 11.313708, %v62_v21  ;;  %v190_v24 = vld [vmem:[#allocation5 + $0xb0] sm:$0xff]  ;;  %v63_v25 = vld [vmem:[#allocation2 + $0xb8] sm:$0xff]  ;;  %314 = vst [vmem:[#allocation7 + $0x90] sm:$0xff] %v250_v17  ;;  %v252_v27 = vadd.f32 %v188_v15, %v124_v18  ;;  %v253_v28 = vadd.f32 %v189_v20, %v125_v19  ;;  %v64_v30 = vld [vmem:[#allocation2 + $0xc0] sm:$0xff] }
  0x31   :  { %v191_v26 = vld [vmem:[#allocation5 + $0xb8] sm:$0xff]  ;;  %v127_v29 = vmul.f32 11.313708, %v63_v25  ;;  %v192_v31 = vld [vmem:[#allocation5 + $0xc0] sm:$0xff]  ;;  %v65_v32 = vld [vmem:[#allocation2 + $0xc8] sm:$0xff]  ;;  %315 = vst [vmem:[#allocation7 + $0x98] sm:$0xff] %v251_v22 }
  0x32   :  { %v254_v33 = vadd.f32 %v190_v24, %v126_v23  ;;  %v128_v34 = vmul.f32 11.313708, %v64_v30  ;;  %v129_v35 = vmul.f32 11.313708, %v65_v32  ;;  %v193_v36 = vld [vmem:[#allocation5 + $0xc8] sm:$0xff]  ;;  %v66_v37 = vld [vmem:[#allocation2 + $0xd0] sm:$0xff] }
  0x33   :  { %316 = vst [vmem:[#allocation7 + $0xa0] sm:$0xff] %v252_v27  ;;  %317 = vst [vmem:[#allocation7 + $0xa8] sm:$0xff] %v253_v28  ;;  %v255_v38 = vadd.f32 %v191_v26, %v127_v29  ;;  %v130_v39 = vmul.f32 11.313708, %v66_v37  ;;  %v194_v40 = vld [vmem:[#allocation5 + $0xd0] sm:$0xff]  ;;  %v67_v41 = vld [vmem:[#allocation2 + $0xd8] sm:$0xff] }
  0x34   :  { %v195_v42 = vld [vmem:[#allocation5 + $0xd8] sm:$0xff]  ;;  %318 = vst [vmem:[#allocation7 + $0xb0] sm:$0xff] %v254_v33  ;;  %v256_v43 = vadd.f32 %v192_v31, %v128_v34  ;;  %v257_v44 = vadd.f32 %v193_v36, %v129_v35  ;;  %v131_v45 = vmul.f32 11.313708, %v67_v41  ;;  %v68_v46 = vld [vmem:[#allocation2 + $0xe0] sm:$0xff]  ;;  %v69_v48 = vld [vmem:[#allocation2 + $0xe8] sm:$0xff] }
  0x35   :  { %v196_v47 = vld [vmem:[#allocation5 + $0xe0] sm:$0xff]  ;;  %319 = vst [vmem:[#allocation7 + $0xb8] sm:$0xff] %v255_v38  ;;  %v258_v49 = vadd.f32 %v194_v40, %v130_v39  ;;  %v132_v50 = vmul.f32 11.313708, %v68_v46  ;;  %v133_v51 = vmul.f32 11.313708, %v69_v48 }
  0x36   :  { %v197_v52 = vld [vmem:[#allocation5 + $0xe8] sm:$0xff]  ;;  %v70_v53 = vld [vmem:[#allocation2 + $0xf0] sm:$0xff]  ;;  %320 = vst [vmem:[#allocation7 + $0xc0] sm:$0xff] %v256_v43  ;;  %321 = vst [vmem:[#allocation7 + $0xc8] sm:$0xff] %v257_v44  ;;  %v259_v54 = vadd.f32 %v195_v42, %v131_v45 }
  0x37   :  { %v134_v55 = vmul.f32 11.313708, %v70_v53  ;;  %v198_v56 = vld [vmem:[#allocation5 + $0xf0] sm:$0xff]  ;;  %v71_v57 = vld [vmem:[#allocation2 + $0xf8] sm:$0xff]  ;;  %322 = vst [vmem:[#allocation7 + $0xd0] sm:$0xff] %v258_v49  ;;  %v260_v59 = vadd.f32 %v196_v47, %v132_v50  ;;  %v261_v60 = vadd.f32 %v197_v52, %v133_v51  ;;  %v72_v62 = vld [vmem:[#allocation2 + $0x100] sm:$0xff] }
  0x38   :  { %v199_v58 = vld [vmem:[#allocation5 + $0xf8] sm:$0xff]  ;;  %v135_v61 = vmul.f32 11.313708, %v71_v57  ;;  %v200_v63 = vld [vmem:[#allocation5 + $0x100] sm:$0xff]  ;;  %v73_v0 = vld [vmem:[#allocation2 + $0x108] sm:$0xff]  ;;  %323 = vst [vmem:[#allocation7 + $0xd8] sm:$0xff] %v259_v54 }
  0x39   :  { %v262_v1 = vadd.f32 %v198_v56, %v134_v55  ;;  %v136_v2 = vmul.f32 11.313708, %v72_v62  ;;  %v137_v3 = vmul.f32 11.313708, %v73_v0  ;;  %v201_v4 = vld [vmem:[#allocation5 + $0x108] sm:$0xff]  ;;  %v74_v5 = vld [vmem:[#allocation2 + $0x110] sm:$0xff] }
  0x3a   :  { %324 = vst [vmem:[#allocation7 + $0xe0] sm:$0xff] %v260_v59  ;;  %325 = vst [vmem:[#allocation7 + $0xe8] sm:$0xff] %v261_v60  ;;  %v263_v6 = vadd.f32 %v199_v58, %v135_v61  ;;  %v138_v7 = vmul.f32 11.313708, %v74_v5  ;;  %v202_v8 = vld [vmem:[#allocation5 + $0x110] sm:$0xff]  ;;  %v75_v9 = vld [vmem:[#allocation2 + $0x118] sm:$0xff] }
  0x3b   :  { %v203_v10 = vld [vmem:[#allocation5 + $0x118] sm:$0xff]  ;;  %326 = vst [vmem:[#allocation7 + $0xf0] sm:$0xff] %v262_v1  ;;  %v264_v11 = vadd.f32 %v200_v63, %v136_v2  ;;  %v265_v12 = vadd.f32 %v201_v4, %v137_v3  ;;  %v139_v13 = vmul.f32 11.313708, %v75_v9  ;;  %v76_v14 = vld [vmem:[#allocation2 + $0x120] sm:$0xff]  ;;  %v77_v16 = vld [vmem:[#allocation2 + $0x128] sm:$0xff] }
  0x3c   :  { %v204_v15 = vld [vmem:[#allocation5 + $0x120] sm:$0xff]  ;;  %327 = vst [vmem:[#allocation7 + $0xf8] sm:$0xff] %v263_v6  ;;  %v266_v17 = vadd.f32 %v202_v8, %v138_v7  ;;  %v140_v18 = vmul.f32 11.313708, %v76_v14  ;;  %v141_v19 = vmul.f32 11.313708, %v77_v16 }
  0x3d   :  { %v205_v20 = vld [vmem:[#allocation5 + $0x128] sm:$0xff]  ;;  %v78_v21 = vld [vmem:[#allocation2 + $0x130] sm:$0xff]  ;;  %328 = vst [vmem:[#allocation7 + $0x100] sm:$0xff] %v264_v11  ;;  %329 = vst [vmem:[#allocation7 + $0x108] sm:$0xff] %v265_v12  ;;  %v267_v22 = vadd.f32 %v203_v10, %v139_v13 }
  0x3e   :  { %v142_v23 = vmul.f32 11.313708, %v78_v21  ;;  %v206_v24 = vld [vmem:[#allocation5 + $0x130] sm:$0xff]  ;;  %v79_v25 = vld [vmem:[#allocation2 + $0x138] sm:$0xff]  ;;  %330 = vst [vmem:[#allocation7 + $0x110] sm:$0xff] %v266_v17  ;;  %v268_v27 = vadd.f32 %v204_v15, %v140_v18  ;;  %v269_v28 = vadd.f32 %v205_v20, %v141_v19  ;;  %v80_v30 = vld [vmem:[#allocation2 + $0x140] sm:$0xff] }
  0x3f   :  { %v207_v26 = vld [vmem:[#allocation5 + $0x138] sm:$0xff]  ;;  %v143_v29 = vmul.f32 11.313708, %v79_v25  ;;  %v208_v31 = vld [vmem:[#allocation5 + $0x140] sm:$0xff]  ;;  %v81_v32 = vld [vmem:[#allocation2 + $0x148] sm:$0xff]  ;;  %331 = vst [vmem:[#allocation7 + $0x118] sm:$0xff] %v267_v22 }
  0x40   :  { %v270_v33 = vadd.f32 %v206_v24, %v142_v23  ;;  %v144_v34 = vmul.f32 11.313708, %v80_v30  ;;  %v145_v35 = vmul.f32 11.313708, %v81_v32  ;;  %v209_v36 = vld [vmem:[#allocation5 + $0x148] sm:$0xff]  ;;  %v82_v37 = vld [vmem:[#allocation2 + $0x150] sm:$0xff] }
  0x41   :  { %332 = vst [vmem:[#allocation7 + $0x120] sm:$0xff] %v268_v27  ;;  %333 = vst [vmem:[#allocation7 + $0x128] sm:$0xff] %v269_v28  ;;  %v271_v38 = vadd.f32 %v207_v26, %v143_v29  ;;  %v146_v39 = vmul.f32 11.313708, %v82_v37  ;;  %v210_v40 = vld [vmem:[#allocation5 + $0x150] sm:$0xff]  ;;  %v83_v41 = vld [vmem:[#allocation2 + $0x158] sm:$0xff] }
  0x42   :  { %v211_v42 = vld [vmem:[#allocation5 + $0x158] sm:$0xff]  ;;  %334 = vst [vmem:[#allocation7 + $0x130] sm:$0xff] %v270_v33  ;;  %v272_v43 = vadd.f32 %v208_v31, %v144_v34  ;;  %v273_v44 = vadd.f32 %v209_v36, %v145_v35  ;;  %v147_v45 = vmul.f32 11.313708, %v83_v41  ;;  %v84_v46 = vld [vmem:[#allocation2 + $0x160] sm:$0xff]  ;;  %v85_v48 = vld [vmem:[#allocation2 + $0x168] sm:$0xff] }
  0x43   :  { %v212_v47 = vld [vmem:[#allocation5 + $0x160] sm:$0xff]  ;;  %335 = vst [vmem:[#allocation7 + $0x138] sm:$0xff] %v271_v38  ;;  %v274_v49 = vadd.f32 %v210_v40, %v146_v39  ;;  %v148_v50 = vmul.f32 11.313708, %v84_v46  ;;  %v149_v51 = vmul.f32 11.313708, %v85_v48 }
  0x44   :  { %v213_v52 = vld [vmem:[#allocation5 + $0x168] sm:$0xff]  ;;  %v86_v53 = vld [vmem:[#allocation2 + $0x170] sm:$0xff]  ;;  %336 = vst [vmem:[#allocation7 + $0x140] sm:$0xff] %v272_v43  ;;  %337 = vst [vmem:[#allocation7 + $0x148] sm:$0xff] %v273_v44  ;;  %v275_v54 = vadd.f32 %v211_v42, %v147_v45 }
  0x45   :  { %v150_v55 = vmul.f32 11.313708, %v86_v53  ;;  %v214_v56 = vld [vmem:[#allocation5 + $0x170] sm:$0xff]  ;;  %v87_v57 = vld [vmem:[#allocation2 + $0x178] sm:$0xff]  ;;  %338 = vst [vmem:[#allocation7 + $0x150] sm:$0xff] %v274_v49  ;;  %v276_v59 = vadd.f32 %v212_v47, %v148_v50  ;;  %v277_v60 = vadd.f32 %v213_v52, %v149_v51  ;;  %v88_v62 = vld [vmem:[#allocation2 + $0x180] sm:$0xff] }
  0x46   :  { %v215_v58 = vld [vmem:[#allocation5 + $0x178] sm:$0xff]  ;;  %v151_v61 = vmul.f32 11.313708, %v87_v57  ;;  %v216_v63 = vld [vmem:[#allocation5 + $0x180] sm:$0xff]  ;;  %v89_v0 = vld [vmem:[#allocation2 + $0x188] sm:$0xff]  ;;  %339 = vst [vmem:[#allocation7 + $0x158] sm:$0xff] %v275_v54 }
  0x47   :  { %v278_v1 = vadd.f32 %v214_v56, %v150_v55  ;;  %v152_v2 = vmul.f32 11.313708, %v88_v62  ;;  %v153_v3 = vmul.f32 11.313708, %v89_v0  ;;  %v217_v4 = vld [vmem:[#allocation5 + $0x188] sm:$0xff]  ;;  %v90_v5 = vld [vmem:[#allocation2 + $0x190] sm:$0xff] }
  0x48   :  { %340 = vst [vmem:[#allocation7 + $0x160] sm:$0xff] %v276_v59  ;;  %341 = vst [vmem:[#allocation7 + $0x168] sm:$0xff] %v277_v60  ;;  %v279_v6 = vadd.f32 %v215_v58, %v151_v61  ;;  %v154_v7 = vmul.f32 11.313708, %v90_v5  ;;  %v218_v8 = vld [vmem:[#allocation5 + $0x190] sm:$0xff]  ;;  %v91_v9 = vld [vmem:[#allocation2 + $0x198] sm:$0xff] }
  0x49   :  { %v219_v10 = vld [vmem:[#allocation5 + $0x198] sm:$0xff]  ;;  %342 = vst [vmem:[#allocation7 + $0x170] sm:$0xff] %v278_v1  ;;  %v280_v11 = vadd.f32 %v216_v63, %v152_v2  ;;  %v281_v12 = vadd.f32 %v217_v4, %v153_v3  ;;  %v155_v13 = vmul.f32 11.313708, %v91_v9  ;;  %v92_v14 = vld [vmem:[#allocation2 + $0x1a0] sm:$0xff]  ;;  %v93_v16 = vld [vmem:[#allocation2 + $0x1a8] sm:$0xff] }
  0x4a   :  { %v220_v15 = vld [vmem:[#allocation5 + $0x1a0] sm:$0xff]  ;;  %343 = vst [vmem:[#allocation7 + $0x178] sm:$0xff] %v279_v6  ;;  %v282_v17 = vadd.f32 %v218_v8, %v154_v7  ;;  %v156_v18 = vmul.f32 11.313708, %v92_v14  ;;  %v157_v19 = vmul.f32 11.313708, %v93_v16 }
  0x4b   :  { %v221_v20 = vld [vmem:[#allocation5 + $0x1a8] sm:$0xff]  ;;  %v94_v21 = vld [vmem:[#allocation2 + $0x1b0] sm:$0xff]  ;;  %344 = vst [vmem:[#allocation7 + $0x180] sm:$0xff] %v280_v11  ;;  %345 = vst [vmem:[#allocation7 + $0x188] sm:$0xff] %v281_v12  ;;  %v283_v22 = vadd.f32 %v219_v10, %v155_v13 }
  0x4c   :  { %v158_v23 = vmul.f32 11.313708, %v94_v21  ;;  %v222_v24 = vld [vmem:[#allocation5 + $0x1b0] sm:$0xff]  ;;  %v95_v25 = vld [vmem:[#allocation2 + $0x1b8] sm:$0xff]  ;;  %346 = vst [vmem:[#allocation7 + $0x190] sm:$0xff] %v282_v17  ;;  %v284_v27 = vadd.f32 %v220_v15, %v156_v18  ;;  %v285_v28 = vadd.f32 %v221_v20, %v157_v19  ;;  %v96_v30 = vld [vmem:[#allocation2 + $0x1c0] sm:$0xff] }
  0x4d   :  { %v223_v26 = vld [vmem:[#allocation5 + $0x1b8] sm:$0xff]  ;;  %v159_v29 = vmul.f32 11.313708, %v95_v25  ;;  %v224_v31 = vld [vmem:[#allocation5 + $0x1c0] sm:$0xff]  ;;  %v97_v32 = vld [vmem:[#allocation2 + $0x1c8] sm:$0xff]  ;;  %347 = vst [vmem:[#allocation7 + $0x198] sm:$0xff] %v283_v22 }
  0x4e   :  { %v286_v33 = vadd.f32 %v222_v24, %v158_v23  ;;  %v160_v34 = vmul.f32 11.313708, %v96_v30  ;;  %v161_v35 = vmul.f32 11.313708, %v97_v32  ;;  %v225_v36 = vld [vmem:[#allocation5 + $0x1c8] sm:$0xff]  ;;  %v98_v37 = vld [vmem:[#allocation2 + $0x1d0] sm:$0xff] }
  0x4f   :  { %348 = vst [vmem:[#allocation7 + $0x1a0] sm:$0xff] %v284_v27  ;;  %349 = vst [vmem:[#allocation7 + $0x1a8] sm:$0xff] %v285_v28  ;;  %v287_v38 = vadd.f32 %v223_v26, %v159_v29  ;;  %v162_v39 = vmul.f32 11.313708, %v98_v37  ;;  %v226_v40 = vld [vmem:[#allocation5 + $0x1d0] sm:$0xff]  ;;  %v99_v41 = vld [vmem:[#allocation2 + $0x1d8] sm:$0xff] }
  0x50   :  { %v227_v42 = vld [vmem:[#allocation5 + $0x1d8] sm:$0xff]  ;;  %350 = vst [vmem:[#allocation7 + $0x1b0] sm:$0xff] %v286_v33  ;;  %v288_v43 = vadd.f32 %v224_v31, %v160_v34  ;;  %v289_v44 = vadd.f32 %v225_v36, %v161_v35  ;;  %v163_v45 = vmul.f32 11.313708, %v99_v41  ;;  %v100_v46 = vld [vmem:[#allocation2 + $0x1e0] sm:$0xff]  ;;  %v101_v48 = vld [vmem:[#allocation2 + $0x1e8] sm:$0xff] }
  0x51   :  { %v228_v47 = vld [vmem:[#allocation5 + $0x1e0] sm:$0xff]  ;;  %351 = vst [vmem:[#allocation7 + $0x1b8] sm:$0xff] %v287_v38  ;;  %v290_v49 = vadd.f32 %v226_v40, %v162_v39  ;;  %v164_v50 = vmul.f32 11.313708, %v100_v46  ;;  %v165_v51 = vmul.f32 11.313708, %v101_v48 }
  0x52   :  { %v229_v52 = vld [vmem:[#allocation5 + $0x1e8] sm:$0xff]  ;;  %v102_v53 = vld [vmem:[#allocation2 + $0x1f0] sm:$0xff]  ;;  %352 = vst [vmem:[#allocation7 + $0x1c0] sm:$0xff] %v288_v43  ;;  %353 = vst [vmem:[#allocation7 + $0x1c8] sm:$0xff] %v289_v44  ;;  %v291_v54 = vadd.f32 %v227_v42, %v163_v45 }
  0x53   :  { %v166_v55 = vmul.f32 11.313708, %v102_v53  ;;  %v230_v56 = vld [vmem:[#allocation5 + $0x1f0] sm:$0xff]  ;;  %v103_v57 = vld [vmem:[#allocation2 + $0x1f8] sm:$0xff]  ;;  %354 = vst [vmem:[#allocation7 + $0x1d0] sm:$0xff] %v290_v49  ;;  %v292_v59 = vadd.f32 %v228_v47, %v164_v50  ;;  %v293_v60 = vadd.f32 %v229_v52, %v165_v51 }
  0x54   :  { %v231_v58 = vld [vmem:[#allocation5 + $0x1f8] sm:$0xff]  ;;  %v167_v61 = vmul.f32 11.313708, %v103_v57  ;;  %355 = vst [vmem:[#allocation7 + $0x1d8] sm:$0xff] %v291_v54 }
  0x55   :  { %v294_v62 = vadd.f32 %v230_v56, %v166_v55  ;;  %356 = vst [vmem:[#allocation7 + $0x1e0] sm:$0xff] %v292_v59  ;;  %357 = vst [vmem:[#allocation7 + $0x1e8] sm:$0xff] %v293_v60 }
  0x56   :  { %v295_v63 = vadd.f32 %v231_v58, %v167_v61 }
  0x57   :  { %358 = vst [vmem:[#allocation7 + $0x1f0] sm:$0xff] %v294_v62 }
  0x58   :  { %359 = vst [vmem:[#allocation7 + $0x1f8] sm:$0xff] %v295_v63 }
  0x59   :  { %434 = shalt.err (!%p431_p0)
}
  0x5a   :  { %371 = dma.vmem_to_hbm [thread:$0]  %s366_s1, 8192, %s489_s2, [#allocation4], %s450_s12, %s450_s12, %s451_s13  }
  0x5b   :  { %447 = dma.done.wait [#allocation4], 8192  }
  0x5c   :  { %448 = vsyncadd [#allocation4], 4294959104 }
  0x5d   :  { %375 = vsyncpa [#allocation3], 1 }
  0x5e   :  { %376 = vsyncpa [#allocation6], 1 }
  0x5f   :  { %377 = vsyncpa [#allocation4], 1 }

</bundles_post_ra>
